<compile_context>
chip_gen: v7x
topology: tpu7x:2x2x1
jax: 0.10.0
libtpu: 0.0.40
codegen_flags: <defaults>
</compile_context>

<pallas_src>
import jax
import jax.numpy as jnp
from jax import lax
from jax.experimental import pallas as pl
from jax.experimental.pallas import tpu as pltpu


def _round_up(n: int, m: int) -> int:
    return ((n + m - 1) // m) * m


def _factorized_linear_kernel(x_ref, vh_ref, u_ref, b_ref, o_ref, t_ref):
    """One (batch-tile, out-tile) grid step of y = (x . vh) . u + bias."""
    j = pl.program_id(1)

    # t = x (.) vh  -> [TM, rank]; computed once per batch tile, reused for
    # every out tile (the out axis is "arbitrary", so j runs 0..nj-1 in order).
    @pl.when(j == 0)
    def _():
        t = lax.dot_general(
            x_ref[...], vh_ref[...],
            dimension_numbers=(((1,), (1,)), ((), ())),   # contract in_features
            preferred_element_type=jnp.float32,
        )
        t_ref[...] = t.astype(t_ref.dtype)

    # y = t (.) u  -> [TM, TN]; contract rank, no transpose needed.
    y = lax.dot_general(
        t_ref[...], u_ref[...],
        dimension_numbers=(((1,), (1,)), ((), ())),       # contract rank
        preferred_element_type=jnp.float32,
    )
    # Bias add in f32, cast only at the final store.
    o_ref[...] = (y + b_ref[...].astype(jnp.float32)).astype(o_ref.dtype)


def prepare_factorized_params(u, vh, bias, *, tn=None):
    """One-time (per-weight) layout prep: zero-pad rank / in / out to 128
    multiples so all kernel tiles are lane-dense and MXU aligned.  Hoisted out
    of the per-call path since weights are static across calls."""
    out_features, rank = u.shape
    rank_vh, in_features = vh.shape
    assert rank_vh == rank, "u/vh rank mismatch"
    assert bias.shape == (out_features,), "bias shape mismatch"

    if tn is None:
        tn = min(256, _round_up(out_features, 128))
    in_p = _round_up(in_features, 128)
    rank_p = _round_up(rank, 128)
    out_p = _round_up(out_features, tn)

    u_p = jnp.zeros((out_p, rank_p), u.dtype).at[:out_features, :rank].set(u)
    vh_p = jnp.zeros((rank_p, in_p), vh.dtype).at[:rank, :in_features].set(vh)
    bias_p = jnp.zeros((1, out_p), bias.dtype).at[0, :out_features].set(bias)

    return {
        "u": u_p,
        "vh": vh_p,
        "bias": bias_p,
        "in_features": in_features,
        "out_features": out_features,
        "rank": rank,
        "tn": tn,
    }


def factorized_linear(x, params, *, tm=None):
    """y = x @ (u @ vh).T + bias via two low-rank Pallas matmuls."""
    u_p, vh_p, bias_p = params["u"], params["vh"], params["bias"]
    in_features = params["in_features"]
    out_features = params["out_features"]
    tn = params["tn"]

    out_p, rank_p = u_p.shape
    _, in_p = vh_p.shape

    batch = x.shape[0]
    assert x.shape[1] == in_features, "x feature dim mismatch"

    if tm is None:
        tm = min(256, _round_up(batch, 8))
    b_p = _round_up(batch, tm)

    # Per-call activation padding only (weights were padded once above).
    if (b_p, in_p) != x.shape:
        x_p = jnp.zeros((b_p, in_p), x.dtype).at[:batch, :in_features].set(x)
    else:
        x_p = x

    ni = b_p // tm
    nj = out_p // tn
    out_dtype = x.dtype
    t_dtype = jnp.bfloat16 if x.dtype == jnp.bfloat16 else jnp.float32

    # Advisory cost estimate: two skinny matmuls, NOT the dense reconstruction.
    itm = lambda dt: jnp.dtype(dt).itemsize
    flops = 2 * b_p * rank_p * in_p + 2 * b_p * rank_p * out_p
    bytes_accessed = (
        x_p.size * itm(x_p.dtype)
        + u_p.size * itm(u_p.dtype)
        + vh_p.size * itm(vh_p.dtype)
        + bias_p.size * itm(bias_p.dtype)
        + b_p * out_p * itm(out_dtype)
    )

    # VMEM budget: resident vh (double-buffered by BlockSpec) + double-buffered
    # x/u/bias/out tiles + the persistent t scratch, with 2x headroom.
    vmem_need = (
        2 * rank_p * in_p * itm(vh_p.dtype)
        + 2 * tm * in_p * itm(x_p.dtype)
        + 2 * tn * rank_p * itm(u_p.dtype)
        + 2 * tn * itm(bias_p.dtype)
        + 2 * tm * tn * itm(out_dtype)
        + tm * rank_p * itm(t_dtype)
    )
    vmem_limit = int(max(4 * 1024 * 1024, min(2 * vmem_need, 64 * 1024 * 1024)))

    grid_spec = pltpu.PrefetchScalarGridSpec(
        num_scalar_prefetch=0,
        grid=(ni, nj),
        in_specs=[
            pl.BlockSpec((tm, in_p), lambda i, j: (i, 0)),       # x batch tile
            pl.BlockSpec((rank_p, in_p), lambda i, j: (0, 0)),   # vh: resident
            pl.BlockSpec((tn, rank_p), lambda i, j: (j, 0)),     # u out tile
            pl.BlockSpec((1, tn), lambda i, j: (0, j)),          # bias out tile
        ],
        out_specs=pl.BlockSpec((tm, tn), lambda i, j: (i, j)),
        scratch_shapes=[pltpu.VMEM((tm, rank_p), t_dtype)],      # t = x . vh
    )

    y_p = pl.pallas_call(
        _factorized_linear_kernel,
        out_shape=jax.ShapeDtypeStruct((b_p, out_p), out_dtype),
        grid_spec=grid_spec,
        compiler_params=pltpu.CompilerParams(
            # batch tiles are independent -> megacore parallel on v7x;
            # out tiles must stay in-order on one core (t scratch reuse).
            dimension_semantics=("parallel", "arbitrary"),
            vmem_limit_bytes=vmem_limit,
        ),
        cost_estimate=pl.CostEstimate(
            flops=int(flops),
            transcendentals=0,
            bytes_accessed=int(bytes_accessed),
        ),
    )(x_p, vh_p, u_p, bias_p)

    # Strip the zero padding (exact: padded rows/cols contribute zero).
    return y_p[:batch, :out_features]


def spectral_init(weight, dim_ratio=1.0):
    """Mirror of FactorizedLinear._spectral_init (SVD, full_matrices=False)."""
    u, s, vh = jnp.linalg.svd(weight, full_matrices=False)
    sqrt_s = jnp.sqrt(s)
    u = u * sqrt_s[None, :]      # u @ diag(sqrt(s))
    vh = sqrt_s[:, None] * vh    # diag(sqrt(s)) @ vh
    if dim_ratio < 1:
        dims = int(u.shape[1] * dim_ratio)
        u = u[:, :dims]
        vh = vh[:dims, :]
    return u, vh


if __name__ == "__main__":
    # Small shapes consistent with nn.Linear(in_features=32, out_features=16).
    batch = 8
    in_features = 32
    out_features = 16
    dim_ratio = 1.0

    key = jax.random.PRNGKey(0)
    k_w, k_b, k_x = jax.random.split(key, 3)

    weight = jax.random.normal(k_w, (out_features, in_features), jnp.float32) * 0.1
    bias = jax.random.normal(k_b, (out_features,), jnp.float32) * 0.1
    x = jax.random.normal(k_x, (batch, in_features), jnp.float32)

    # Factorize exactly as FactorizedLinear.__init__ does.
    u, vh = spectral_init(weight, dim_ratio=dim_ratio)

    # One-time weight layout prep (static across calls), then the kernel call.
    params = prepare_factorized_params(u, vh, bias)
    y = factorized_linear(x, params)
    y = jax.block_until_ready(y)

    # Reference: same math as the torch forward.
    y_ref = x @ (u @ vh).T + bias
    assert y.shape == (batch, out_features)
    assert jnp.allclose(y, y_ref, atol=1e-4, rtol=1e-4), "mismatch vs reference"

    print("KERNEL_OK")
</pallas_src>

<mosaic_0001>
module attributes {stable_mosaic.version = 11 : i64} {
  func.func @_factorized_linear_kernel(%arg0: i32, %arg1: i32, %arg2: memref<8x128xf32, #tpu.memory_space<vmem>>, %arg3: memref<128x128xf32, #tpu.memory_space<vmem>>, %arg4: memref<128x128xf32, #tpu.memory_space<vmem>>, %arg5: memref<1x128xf32, #tpu.memory_space<vmem>>, %arg6: memref<8x128xf32, #tpu.memory_space<vmem>>, %arg7: memref<8x128xf32, #tpu.memory_space<vmem>>) attributes {dimension_semantics = [#tpu.dimension_semantics<parallel>, #tpu.dimension_semantics<arbitrary>], iteration_bounds = array<i64: 1, 1>, scalar_prefetch = 0 : i64, scratch_operands = 1 : i64, tpu.core_type = #tpu.core_type<tc>, window_params = [{transform_indices = @transform_0, window_bounds = array<i64: 8, 128>}, {pipeline_mode = #tpu.pipeline_mode<synchronous>, transform_indices = @transform_1, window_bounds = array<i64: 128, 128>}, {transform_indices = @transform_2, window_bounds = array<i64: 128, 128>}, {transform_indices = @transform_3, window_bounds = array<i64: 1, 128>}, {transform_indices = @transform_4, window_bounds = array<i64: 8, 128>}]} {
    %c0_i32 = arith.constant 0 : i32
    %0 = arith.cmpi eq, %arg1, %c0_i32 : i32
    %1 = arith.extui %0 : i1 to i32
    %c0_i32_0 = arith.constant 0 : i32
    %2 = arith.cmpi ne, %1, %c0_i32_0 : i32
    scf.if %2 {
      %c0_8 = arith.constant 0 : index
      %c0_9 = arith.constant 0 : index
      %10 = vector.load %arg2[%c0_8, %c0_9] : memref<8x128xf32, #tpu.memory_space<vmem>>, vector<8x128xf32>
      %c0_10 = arith.constant 0 : index
      %c0_11 = arith.constant 0 : index
      %11 = vector.load %arg3[%c0_10, %c0_11] : memref<128x128xf32, #tpu.memory_space<vmem>>, vector<128x128xf32>
      %cst_12 = arith.constant dense<0.000000e+00> : vector<8x128xf32>
      %12 = tpu.matmul %10, %11, %cst_12 {dimension_numbers = #tpu.dot_dimension_numbers<[1], [1], [0], [0], [0, 0, 1, 0], [], []>} : vector<8x128xf32>, vector<128x128xf32>, vector<8x128xf32> -> vector<8x128xf32>
      %c0_13 = arith.constant 0 : index
      %c0_14 = arith.constant 0 : index
      %13 = vector.load %arg7[%c0_13, %c0_14] : memref<8x128xf32, #tpu.memory_space<vmem>>, vector<8x128xf32>
      tpu.vector_store %arg7[%c0_13, %c0_14], %12 {strides = array<i32>} : memref<8x128xf32, #tpu.memory_space<vmem>>, vector<8x128xf32>,
    } else {
    }
    %c0 = arith.constant 0 : index
    %c0_1 = arith.constant 0 : index
    %3 = vector.load %arg7[%c0, %c0_1] : memref<8x128xf32, #tpu.memory_space<vmem>>, vector<8x128xf32>
    %c0_2 = arith.constant 0 : index
    %c0_3 = arith.constant 0 : index
    %4 = vector.load %arg4[%c0_2, %c0_3] : memref<128x128xf32, #tpu.memory_space<vmem>>, vector<128x128xf32>
    %cst = arith.constant dense<0.000000e+00> : vector<8x128xf32>
    %5 = tpu.matmul %3, %4, %cst {dimension_numbers = #tpu.dot_dimension_numbers<[1], [1], [0], [0], [0, 0, 1, 0], [], []>} : vector<8x128xf32>, vector<128x128xf32>, vector<8x128xf32> -> vector<8x128xf32>
    %c0_4 = arith.constant 0 : index
    %c0_5 = arith.constant 0 : index
    %6 = vector.load %arg5[%c0_4, %c0_5] : memref<1x128xf32, #tpu.memory_space<vmem>>, vector<1x128xf32>
    %7 = vector.broadcast %6 : vector<1x128xf32> to vector<8x128xf32>
    %8 = arith.addf %5, %7 : vector<8x128xf32>
    %c0_6 = arith.constant 0 : index
    %c0_7 = arith.constant 0 : index
    %9 = vector.load %arg6[%c0_6, %c0_7] : memref<8x128xf32, #tpu.memory_space<vmem>>, vector<8x128xf32>
    tpu.vector_store %arg6[%c0_6, %c0_7], %8 {strides = array<i32>} : memref<8x128xf32, #tpu.memory_space<vmem>>, vector<8x128xf32>,
    return
  }
  func.func @transform_0(%arg0: i32, %arg1: i32) -> (i32, i32) {
    %c0_i32 = arith.constant 0 : i32
    %c0_i32_0 = arith.constant 0 : i32
    return %arg0, %c0_i32 : i32, i32
  }
  func.func @transform_1(%arg0: i32, %arg1: i32) -> (i32, i32) {
    %c0_i32 = arith.constant 0 : i32
    %c0_i32_0 = arith.constant 0 : i32
    %c0_i32_1 = arith.constant 0 : i32
    return %c0_i32, %c0_i32_0 : i32, i32
  }
  func.func @transform_2(%arg0: i32, %arg1: i32) -> (i32, i32) {
    %c0_i32 = arith.constant 0 : i32
    %c0_i32_0 = arith.constant 0 : i32
    return %arg1, %c0_i32 : i32, i32
  }
  func.func @transform_3(%arg0: i32, %arg1: i32) -> (i32, i32) {
    %c0_i32 = arith.constant 0 : i32
    %c0_i32_0 = arith.constant 0 : i32
    return %c0_i32, %arg1 : i32, i32
  }
  func.func @transform_4(%arg0: i32, %arg1: i32) -> (i32, i32) {
    %c0_i32 = arith.constant 0 : i32
    return %arg0, %arg1 : i32, i32
  }
}

</mosaic_0001>

<bundles_post_ra>
// kernel: tpu_custom_call.1
= control target key start
LH: loop header
LB: loop body
LE: loop exit
PB: predicated region body
PF: predicated region fallthrough
CT: control target
= control target key end

     0   :  { %9 = vsyncpa [#allocation4], 0  ;;  %s623_s0 = inlined_call_operand.hbm [shape: f32[8,128], index: 0, kind: input, shape index: {}]   ;;  %s624_s1 = inlined_call_operand.hbm [shape: f32[128,128], index: 1, kind: input, shape index: {}]   ;;  %s625_s2 = inlined_call_operand.hbm [shape: f32[128,128], index: 2, kind: input, shape index: {}]   ;;  %s626_s3 = inlined_call_operand.vmem [shape: f32[1,128], index: 3, kind: input, shape index: {}]   ;;  %s627_s4 = inlined_call_operand.hbm [shape: f32[8,128], index: 4, kind: output, shape index: {}]  }
   0x1   :  { %10 = vsyncpa [#allocation7], 0 }
   0x2   :  { %11 = vsyncpa [#allocation5], 0  ;;  %s516_s15 = smov [#allocation6]   ;;  %s422_s19 = scalar_lea.hbm %s624_s1, 2048 }
   0x3   :  { %s27_s16 = sshll.u32 %s516_s15, 4  ;;  %p423_p0 = scmp.ne.s32.totalorder %s624_s1, %s422_s19  ;;  %s28_s16 = int_to_ptr.vmem [resolvable:$true] %s27_s16 }
   0x4   :  { %p426_p1 = scmp.lt.u32.totalorder %s422_s19, %s624_s1 }
   0x6   :  { %p428_p2 = pnand %p426_p1, %p423_p0 }
   0x8   :  { %431 = shalt.err (!%p428_p2)
}
   0x9   :  { %s432_s24 = scalar_lea.vmem %s28_s16, 2048  ;;  %p437_p4 = scmp.lt.s32.totalorder %s28_s16, %s28_s16 }
   0xa   :  { %p433_p3 = scmp.ne.s32.totalorder %s28_s16, %s432_s24  ;;  %p438_p5 = scmp.lt.s32.totalorder %s432_s24, %s432_s24 }
   0xc   :  { %p439_p6 = por %p438_p5, %p437_p4 }
   0xe   :  { %p440_p7 = pnand %p439_p6, %p433_p3 }
  0x10   :  { %443 = shalt.err (!%p440_p7)
}
  0x11   :  { %s517_s25 = smov 128   ;;  %s518_s26 = smov 8  }
  0x12   :  { %33 = dma.hbm_to_vmem [thread:$0]  %s624_s1, 2048, %s28_s16, [#allocation7], %s517_s25, %s517_s25, %s518_s26  }
  0x13   :  { %s519_s29 = smov [#allocation3]   ;;  %s520_s5 = smov [#allocation8]  }
  0x14   :  { %s18_s30 = sshll.u32 %s519_s29, 4  ;;  %s39_s6 = sshll.u32 %s520_s5, 4  ;;  %s19_s30 = int_to_ptr.vmem [resolvable:$true] %s18_s30  ;;  %s40_s6 = int_to_ptr.vmem [resolvable:$true] %s39_s6 }
  0x15   :  { %s444_s9 = scalar_lea.hbm %s623_s0, 128 }
  0x16   :  { %p445_p8 = scmp.ne.s32.totalorder %s623_s0, %s444_s9  ;;  %p448_p9 = scmp.lt.u32.totalorder %s444_s9, %s623_s0 }
  0x18   :  { %p450_p10 = pnand %p448_p9, %p445_p8 }
  0x1a   :  { %453 = shalt.err (!%p450_p10)
}
  0x1b   :  { %s454_s1 = scalar_lea.vmem %s19_s30, 128  ;;  %p459_p12 = scmp.lt.s32.totalorder %s19_s30, %s19_s30 }
  0x1c   :  { %p455_p11 = scmp.ne.s32.totalorder %s19_s30, %s454_s1  ;;  %p460_p13 = scmp.lt.s32.totalorder %s454_s1, %s454_s1 }
  0x1e   :  { %p461_p0 = por %p460_p13, %p459_p12 }
  0x20   :  { %p462_p1 = pnand %p461_p0, %p455_p11 }
  0x22   :  { %465 = shalt.err (!%p462_p1)
}
  0x23   :  { %21 = dma.hbm_to_vmem [thread:$0]  %s623_s0, 128, %s19_s30, [#allocation4]  }
  0x24   :  { %s466_s18 = scalar_lea.hbm %s625_s2, 2048 }
  0x25   :  { %p467_p2 = scmp.ne.s32.totalorder %s625_s2, %s466_s18  ;;  %p470_p3 = scmp.lt.u32.totalorder %s466_s18, %s625_s2 }
  0x27   :  { %p472_p4 = pnand %p470_p3, %p467_p2 }
  0x29   :  { %475 = shalt.err (!%p472_p4)
}
  0x2a   :  { %s476_s23 = scalar_lea.vmem %s40_s6, 2048  ;;  %p481_p6 = scmp.lt.s32.totalorder %s40_s6, %s40_s6 }
  0x2b   :  { %p477_p5 = scmp.ne.s32.totalorder %s40_s6, %s476_s23  ;;  %p482_p7 = scmp.lt.s32.totalorder %s476_s23, %s476_s23 }
  0x2d   :  { %p483_p8 = por %p482_p7, %p481_p6 }
  0x2f   :  { %p484_p9 = pnand %p483_p8, %p477_p5 }
  0x31   :  { %487 = shalt.err (!%p484_p9)
}
  0x32   :  { %45 = dma.hbm_to_vmem [thread:$0]  %s625_s2, 2048, %s40_s6, [#allocation7], %s517_s25, %s517_s25, %s518_s26  }
  0x33   :  { %510 = dma.done.wait [#allocation4], 128  }
  0x34   :  { %511 = vsyncadd [#allocation4], 4294967168 }
  0x35   :  { %512 = dma.done.wait [#allocation7], 4096  }
  0x36   :  { %513 = vsyncadd [#allocation7], 4294963200  ;;  %v521_v0 = vmov 0.0|0.0   ;;  %vm522_vm0 = vmmov 0   ;;  %v523_v1 = vmov 0.0   ;;  %v62_v2 = vld [vmem:[#allocation6] sm:$0xff] }
  0x37   :  { %365 = vmatprep.subr.bf16.mxu0 %v521_v0  ;;  %327 = vmatprep.mubr.msk.f32.mxu0 %vm522_vm0, %v523_v1  ;;  %v63_v3 = vld [vmem:[#allocation6 + $0x8] sm:$0xff]  ;;  %v64_v5 = vld [vmem:[#allocation6 + $0x10] sm:$0xff]  ;;  %v65_v6 = vld [vmem:[#allocation6 + $0x18] sm:$0xff]  ;;  %s524_s26 = smov [#allocation9]  }
  0x38   :  { %389 = vmatprep.subr.bf16.mxu1 %v521_v0  ;;  %362 = vmatprep.mubr.msk.f32.mxu1 %vm522_vm0, %v523_v1  ;;  %v366_v4 = vpack.c.bf16 %v63_v3, %v62_v2  ;;  %v150_v7 = vld [vmem:[#allocation8] sm:$0xff]  ;;  %v151_v8 = vld [vmem:[#allocation8 + $0x8] sm:$0xff]  ;;  %v369_v9 = vpack.c.bf16 %v65_v6, %v64_v5  ;;  %v152_v11 = vld [vmem:[#allocation8 + $0x10] sm:$0xff]  ;;  %s250_s27 = sshll.u32 %s524_s26, 4  ;;  %s251_s27 = int_to_ptr.vmem [resolvable:$true] %s250_s27 }
  0x39   :  { %v390_v10 = vpack.c.bf16 %v151_v8, %v150_v7  ;;  %v153_v12 = vld [vmem:[#allocation8 + $0x18] sm:$0xff]  ;;  %v66_v13 = vld [vmem:[#allocation6 + $0x20] sm:$0xff]  ;;  %v67_v14 = vld [vmem:[#allocation6 + $0x28] sm:$0xff]  ;;  %s488_s28 = scalar_lea.vmem %s251_s27, 128  ;;  %p493_p11 = scmp.lt.s32.totalorder %s251_s27, %s251_s27 }
  0x3a   :  { %367 = vmatpush3.bf16.xpose.msra.mxu0 %v366_v4  ;;  %v393_v15 = vpack.c.bf16 %v153_v12, %v152_v11  ;;  %v372_v16 = vpack.c.bf16 %v67_v14, %v66_v13  ;;  %v154_v17 = vld [vmem:[#allocation8 + $0x20] sm:$0xff]  ;;  %v155_v18 = vld [vmem:[#allocation8 + $0x28] sm:$0xff]  ;;  %v68_v19 = vld [vmem:[#allocation6 + $0x30] sm:$0xff]  ;;  %p489_p10 = scmp.ne.s32.totalorder %s251_s27, %s488_s28  ;;  %p494_p12 = scmp.lt.s32.totalorder %s488_s28, %s488_s28 }
  0x3b   :  { %368 = vmatprep.subr.bf16.mxu0 %v521_v0  ;;  %391 = vmatpush3.bf16.xpose.msra.mxu1 %v390_v10  ;;  %v69_v20 = vld [vmem:[#allocation6 + $0x38] sm:$0xff]  ;;  %v396_v21 = vpack.c.bf16 %v155_v18, %v154_v17  ;;  %v156_v23 = vld [vmem:[#allocation8 + $0x30] sm:$0xff]  ;;  %v70_v25 = vld [vmem:[#allocation6 + $0x40] sm:$0xff] }
  0x3c   :  { %392 = vmatprep.subr.bf16.mxu1 %v521_v0  ;;  %v375_v22 = vpack.c.bf16 %v69_v20, %v68_v19  ;;  %v157_v24 = vld [vmem:[#allocation8 + $0x38] sm:$0xff]  ;;  %v71_v26 = vld [vmem:[#allocation6 + $0x48] sm:$0xff]  ;;  %v158_v29 = vld [vmem:[#allocation8 + $0x40] sm:$0xff]  ;;  %p495_p13 = por %p494_p12, %p493_p11 }
  0x3d   :  { %v399_v27 = vpack.c.bf16 %v157_v24, %v156_v23  ;;  %v378_v28 = vpack.c.bf16 %v71_v26, %v70_v25  ;;  %v159_v30 = vld [vmem:[#allocation8 + $0x48] sm:$0xff]  ;;  %v72_v31 = vld [vmem:[#allocation6 + $0x50] sm:$0xff]  ;;  %v73_v32 = vld [vmem:[#allocation6 + $0x58] sm:$0xff] }
  0x3e   :  { %v402_v33 = vpack.c.bf16 %v159_v30, %v158_v29  ;;  %v381_v34 = vpack.c.bf16 %v73_v32, %v72_v31  ;;  %v160_v35 = vld [vmem:[#allocation8 + $0x50] sm:$0xff]  ;;  %v161_v36 = vld [vmem:[#allocation8 + $0x58] sm:$0xff]  ;;  %v74_v37 = vld [vmem:[#allocation6 + $0x60] sm:$0xff]  ;;  %p496_p0 = pnand %p495_p13, %p489_p10 }
  0x3f   :  { %v75_v38 = vld [vmem:[#allocation6 + $0x68] sm:$0xff]  ;;  %v405_v39 = vpack.c.bf16 %v161_v36, %v160_v35  ;;  %v162_v41 = vld [vmem:[#allocation8 + $0x60] sm:$0xff]  ;;  %v76_v43 = vld [vmem:[#allocation6 + $0x70] sm:$0xff] }
  0x40   :  { %v384_v40 = vpack.c.bf16 %v75_v38, %v74_v37  ;;  %v163_v42 = vld [vmem:[#allocation8 + $0x68] sm:$0xff]  ;;  %v77_v44 = vld [vmem:[#allocation6 + $0x78] sm:$0xff]  ;;  %v164_v47 = vld [vmem:[#allocation8 + $0x70] sm:$0xff] }
  0x41   :  { %v408_v45 = vpack.c.bf16 %v163_v42, %v162_v41  ;;  %v387_v46 = vpack.c.bf16 %v77_v44, %v76_v43  ;;  %v165_v48 = vld [vmem:[#allocation8 + $0x78] sm:$0xff] }
  0x42   :  { %370 = vmatpush3.bf16.xpose.msra.mxu0 %v369_v9  ;;  %v411_v49 = vpack.c.bf16 %v165_v48, %v164_v47  ;;  %v61_v50 = vld [vmem:[#allocation3] sm:$0xff] }
  0x43   :  { %371 = vmatprep.subr.bf16.mxu0 %v521_v0  ;;  %394 = vmatpush3.bf16.xpose.msra.mxu1 %v393_v15  ;;  %v260_v53 = vld [vmem:[%s626_s3] ss:$0 sm:$0xff] }
  0x44   :  { %395 = vmatprep.subr.bf16.mxu1 %v521_v0 }
  0x4a   :  { %373 = vmatpush3.bf16.xpose.msra.mxu0 %v372_v16 }
  0x4b   :  { %374 = vmatprep.subr.bf16.mxu0 %v521_v0  ;;  %397 = vmatpush3.bf16.xpose.msra.mxu1 %v396_v21 }
  0x4c   :  { %398 = vmatprep.subr.bf16.mxu1 %v521_v0 }
  0x52   :  { %376 = vmatpush3.bf16.xpose.msra.mxu0 %v375_v22 }
  0x53   :  { %377 = vmatprep.subr.bf16.mxu0 %v521_v0  ;;  %400 = vmatpush3.bf16.xpose.msra.mxu1 %v399_v27 }
  0x54   :  { %401 = vmatprep.subr.bf16.mxu1 %v521_v0 }
  0x5a   :  { %379 = vmatpush3.bf16.xpose.msra.mxu0 %v378_v28 }
  0x5b   :  { %380 = vmatprep.subr.bf16.mxu0 %v521_v0  ;;  %403 = vmatpush3.bf16.xpose.msra.mxu1 %v402_v33 }
  0x5c   :  { %404 = vmatprep.subr.bf16.mxu1 %v521_v0 }
  0x62   :  { %382 = vmatpush3.bf16.xpose.msra.mxu0 %v381_v34 }
  0x63   :  { %383 = vmatprep.subr.bf16.mxu0 %v521_v0  ;;  %406 = vmatpush3.bf16.xpose.msra.mxu1 %v405_v39 }
  0x64   :  { %407 = vmatprep.subr.bf16.mxu1 %v521_v0 }
  0x6a   :  { %385 = vmatpush3.bf16.xpose.msra.mxu0 %v384_v40 }
  0x6b   :  { %386 = vmatprep.subr.bf16.mxu0 %v521_v0  ;;  %409 = vmatpush3.bf16.xpose.msra.mxu1 %v408_v45 }
  0x6c   :  { %410 = vmatprep.subr.bf16.mxu1 %v521_v0 }
  0x72   :  { %388 = vmatpush3.bf16.xpose.msra.mxu0 %v387_v46 }
  0x73   :  { %412 = vmatpush3.bf16.xpose.msra.mxu1 %v411_v49 }
  0x79   :  { %328 = vmatmul.mubr.f32.vlgmr.msra.gmra.mrb[0].mxu0 %v61_v50 }
 0x14c   :  { %v144_v51 = vpop.f32.mrb[0].mxu0 }
 0x14d   :  { %v329_v52 = vpop.f32.mrb[1].mxu0  ;;  %363 = vmatmul.mubr.f32.vlgmr.msra.gmra.mrb[0].mxu1 %v144_v51 }
 0x220   :  { %v239_v54 = vpop.f32.mrb[0].mxu1 }
 0x221   :  { %v240_v55 = vadd.f32 %v260_v53, %v239_v54  ;;  %v364_v56 = vpop.f32.mrb[1].mxu1 }
 0x223   :  { %243 = vst [vmem:[#allocation9] sm:$0xff] %v240_v55 }
 0x224   :  { %499 = shalt.err (!%p496_p0)
}
 0x225   :  { %s500_s5 = scalar_lea.hbm %s627_s4, 128 }
 0x226   :  { %p501_p1 = scmp.ne.s32.totalorder %s627_s4, %s500_s5  ;;  %p504_p2 = scmp.lt.u32.totalorder %s500_s5, %s627_s4 }
 0x228   :  { %p506_p3 = pnand %p504_p2, %p501_p1 }
 0x22a   :  { %509 = shalt.err (!%p506_p3)
}
 0x22b   :  { %253 = dma.vmem_to_hbm [thread:$0]  %s251_s27, 128, %s627_s4, [#allocation5]  }
 0x22c   :  { %514 = dma.done.wait [#allocation5], 128  }
 0x22d   :  { %515 = vsyncadd [#allocation5], 4294967168 }
 0x22e   :  { %257 = vsyncpa [#allocation4], 1 }
 0x22f   :  { %258 = vsyncpa [#allocation7], 1 }
 0x230   :  { %259 = vsyncpa [#allocation5], 1 }

</bundles_post_ra>
